<compile_context>
chip_gen: v7x
topology: tpu7x:2x2x1
jax: 0.10.0
libtpu: 0.0.40
codegen_flags: <defaults>
</compile_context>

<pallas_src>
import functools

import numpy as np
import jax
import jax.numpy as jnp
from jax.experimental import pallas as pl
from jax.experimental.pallas import tpu as pltpu

LANE = 128
SUBLANE = 8


def _round_up(x, m):
    return (x + m - 1) // m * m


# ----------------------------------------------------------------------------
# Pallas kernel: single fused (actor | critic) head matmul
#   out = cast_bf16(x) @ W_fused (bf16, f32 accumulate) + b_fused
#   out[:, :num_actions]  -> policy logits
#   out[:,  num_actions]  -> value
# ----------------------------------------------------------------------------
def a2c_heads_kernel(x_ref, w_ref, b_ref, out_ref):
    x = x_ref[...].astype(jnp.bfloat16)          # (TILE_B, OBS) VPU cast, free under MXU
    w = w_ref[...].astype(jnp.bfloat16)          # (OBS, OUT_PAD) no-op when stored bf16
    acc = jnp.dot(x, w, preferred_element_type=jnp.float32)
    out_ref[...] = (acc + b_ref[...]).astype(out_ref.dtype)   # (1, OUT_PAD) bias broadcast


def a2c_forward(state, w_fused, b_fused, num_actions, *, tile_b=512):
    """Pallas implementation of A2CNet.forward.

    Returns (policy, value, feature) matching the PyTorch module:
      policy  : (B, num_actions)
      value   : (B,)                (torch.squeeze of the (B, 1) critic output)
      feature : (B, obs_size)       (identity feature encoder, see TODO above)
    """
    B, obs = state.shape
    obs_w, out_pad = w_fused.shape
    assert obs_w == obs, "fused weight rows must match obs_size"
    assert out_pad % LANE == 0 and num_actions + 1 <= out_pad

    # Batch tile: sublane-aligned, capped at `tile_b` rows.  For B <= tile_b
    # the whole (8-row-aligned) batch is a single tile -> no extra HBM copy.
    tile_b = min(tile_b, _round_up(B, SUBLANE))
    b_pad = _round_up(B, tile_b)

    x = state if b_pad == B else jnp.pad(state, ((0, b_pad - B), (0, 0)))

    grid = (b_pad // tile_b,)

    bytes_accessed = (
        x.size * x.dtype.itemsize
        + w_fused.size * w_fused.dtype.itemsize
        + b_fused.size * b_fused.dtype.itemsize
        + b_pad * out_pad * 4
    )
    cost = pl.CostEstimate(
        flops=2 * b_pad * obs * out_pad,
        transcendentals=0,
        bytes_accessed=bytes_accessed,
    )

    out = pl.pallas_call(
        a2c_heads_kernel,
        out_shape=jax.ShapeDtypeStruct((b_pad, out_pad), jnp.float32),
        grid=grid,
        in_specs=[
            pl.BlockSpec((tile_b, obs), lambda i: (i, 0)),     # state tile, pipelined
            pl.BlockSpec((obs, out_pad), lambda i: (0, 0)),    # fused weight, VMEM-resident
            pl.BlockSpec((1, out_pad), lambda i: (0, 0)),      # fused bias, VMEM-resident
        ],
        out_specs=pl.BlockSpec((tile_b, out_pad), lambda i: (i, 0)),
        compiler_params=pltpu.CompilerParams(
            dimension_semantics=("parallel",),   # batch axis shards across TCs on v7x
        ),
        cost_estimate=cost,
    )(x, w_fused, b_fused)

    policy = out[:B, :num_actions]
    value = out[:B, num_actions]
    feature = state                      # identity feature encoder
    return policy, value, feature


# ----------------------------------------------------------------------------
# Deterministic parameter init (mirrors nn.init.orthogonal_ + zero bias),
# producing the fused kernel layout directly.  QR runs on host (numpy) to keep
# the on-TPU program just the Pallas kernel.
# ----------------------------------------------------------------------------
def orthogonal_(key, out_features, in_features, gain=1.0):
    """PyTorch-style orthogonal init; returns numpy weight in (out, in) layout."""
    rows, cols = out_features, in_features
    flat_shape = (rows, cols) if rows >= cols else (cols, rows)
    a = np.asarray(jax.random.normal(key, flat_shape, dtype=jnp.float32))
    q, r = np.linalg.qr(a)
    d = np.sign(np.diagonal(r))
    d = np.where(d == 0, 1.0, d)         # avoid zeroing a column on exact-zero diag
    q = q * d[None, :]
    if rows < cols:
        q = q.T
    return gain * q                      # (out, in)


def init_a2c_params(key, obs_size, num_actions, param_dtype=jnp.bfloat16):
    """Fused head parameters in kernel layout.

    Returns:
      w_fused : (obs_size, out_pad) bf16; cols [0, num_actions) actor,
                col num_actions critic, remaining cols zero.
      b_fused : (1, out_pad) f32 (all zeros: torch constant_(0) bias init).
    """
    out_pad = _round_up(num_actions + 1, LANE)

    k_actor, k_critic = jax.random.split(key)
    wa = orthogonal_(k_actor, num_actions, obs_size)   # (num_actions, obs)
    wc = orthogonal_(k_critic, 1, obs_size)            # (1, obs)
    w_heads = np.concatenate([wa, wc], axis=0).T       # (obs, num_actions + 1)

    w_fused = np.zeros((obs_size, out_pad), np.float32)
    w_fused[:, : num_actions + 1] = w_heads
    b_fused = jnp.zeros((1, out_pad), jnp.float32)
    return jnp.asarray(w_fused, dtype=param_dtype), b_fused


# ----------------------------------------------------------------------------
# Pure-JAX reference (same bf16-operand / f32-accumulate math as the kernel)
# ----------------------------------------------------------------------------
def a2c_forward_ref(state, w_fused, b_fused, num_actions):
    x = state.astype(jnp.bfloat16)
    w = w_fused.astype(jnp.bfloat16)
    out = jnp.dot(x, w, preferred_element_type=jnp.float32) + b_fused
    policy = out[:, :num_actions]
    value = out[:, num_actions]
    return policy, value, state


if __name__ == "__main__":
    key = jax.random.PRNGKey(0)
    k_params, k_state, k_state2 = jax.random.split(key, 3)

    B = 8            # batch
    OBS = 32         # obs_size
    NUM_ACTIONS = 4  # action-space size

    w_fused, b_fused = init_a2c_params(k_params, OBS, NUM_ACTIONS)
    state = jax.random.normal(k_state, (B, OBS), dtype=jnp.float32)

    fwd = jax.jit(functools.partial(a2c_forward, num_actions=NUM_ACTIONS))
    policy, value, feature = fwd(state, w_fused, b_fused)
    jax.block_until_ready((policy, value, feature))

    p_ref, v_ref, f_ref = a2c_forward_ref(state, w_fused, b_fused, NUM_ACTIONS)
    assert policy.shape == (B, NUM_ACTIONS)
    assert value.shape == (B,)
    assert feature.shape == (B, OBS)
    assert jnp.allclose(policy, p_ref, atol=2e-3, rtol=2e-3)
    assert jnp.allclose(value, v_ref, atol=2e-3, rtol=2e-3)
    assert jnp.allclose(feature, f_ref)

    # Small multi-tile batch: exercises the batch grid (3 tiles) + row padding.
    B2, TILE2 = 20, 8
    state2 = jax.random.normal(k_state2, (B2, OBS), dtype=jnp.float32)
    fwd2 = jax.jit(functools.partial(a2c_forward, num_actions=NUM_ACTIONS, tile_b=TILE2))
    p2, v2, f2 = fwd2(state2, w_fused, b_fused)
    jax.block_until_ready((p2, v2, f2))
    p2_ref, v2_ref, _ = a2c_forward_ref(state2, w_fused, b_fused, NUM_ACTIONS)
    assert p2.shape == (B2, NUM_ACTIONS) and v2.shape == (B2,)
    assert jnp.allclose(p2, p2_ref, atol=2e-3, rtol=2e-3)
    assert jnp.allclose(v2, v2_ref, atol=2e-3, rtol=2e-3)

    print("KERNEL_OK")
</pallas_src>

<mosaic_0001>
module attributes {stable_mosaic.version = 11 : i64} {
  func.func @a2c_heads_kernel(%arg0: i32, %arg1: memref<8x32xf32, #tpu.memory_space<vmem>>, %arg2: memref<32x128xbf16, #tpu.memory_space<vmem>>, %arg3: memref<1x128xf32, #tpu.memory_space<vmem>>, %arg4: memref<8x128xf32, #tpu.memory_space<vmem>>) attributes {dimension_semantics = [#tpu.dimension_semantics<parallel>], iteration_bounds = array<i64: 1>, scalar_prefetch = 0 : i64, scratch_operands = 0 : i64, tpu.core_type = #tpu.core_type<tc>, window_params = [{transform_indices = @transform_0, window_bounds = array<i64: 8, 32>}, {pipeline_mode = #tpu.pipeline_mode<synchronous>, transform_indices = @transform_1, window_bounds = array<i64: 32, 128>}, {pipeline_mode = #tpu.pipeline_mode<synchronous>, transform_indices = @transform_2, window_bounds = array<i64: 1, 128>}, {transform_indices = @transform_3, window_bounds = array<i64: 8, 128>}]} {
    %c0 = arith.constant 0 : index
    %c0_0 = arith.constant 0 : index
    %0 = vector.load %arg1[%c0, %c0_0] : memref<8x32xf32, #tpu.memory_space<vmem>>, vector<8x32xf32>
    %1 = arith.truncf %0 : vector<8x32xf32> to vector<8x32xbf16>
    %c0_1 = arith.constant 0 : index
    %c0_2 = arith.constant 0 : index
    %2 = vector.load %arg2[%c0_1, %c0_2] : memref<32x128xbf16, #tpu.memory_space<vmem>>, vector<32x128xbf16>
    %cst = arith.constant dense<0.000000e+00> : vector<8x128xf32>
    %3 = tpu.matmul %1, %2, %cst {dimension_numbers = #tpu.dot_dimension_numbers<[1], [0], [0], [1], [0, 0, 1, 1], [], []>} : vector<8x32xbf16>, vector<32x128xbf16>, vector<8x128xf32> -> vector<8x128xf32>
    %c0_3 = arith.constant 0 : index
    %c0_4 = arith.constant 0 : index
    %4 = vector.load %arg3[%c0_3, %c0_4] : memref<1x128xf32, #tpu.memory_space<vmem>>, vector<1x128xf32>
    %5 = vector.broadcast %4 : vector<1x128xf32> to vector<8x128xf32>
    %6 = arith.addf %3, %5 : vector<8x128xf32>
    %c0_5 = arith.constant 0 : index
    %c0_6 = arith.constant 0 : index
    %7 = vector.load %arg4[%c0_5, %c0_6] : memref<8x128xf32, #tpu.memory_space<vmem>>, vector<8x128xf32>
    tpu.vector_store %arg4[%c0_5, %c0_6], %6 {strides = array<i32>} : memref<8x128xf32, #tpu.memory_space<vmem>>, vector<8x128xf32>,
    return
  }
  func.func @transform_0(%arg0: i32) -> (i32, i32) {
    %c0_i32 = arith.constant 0 : i32
    %c0_i32_0 = arith.constant 0 : i32
    return %arg0, %c0_i32 : i32, i32
  }
  func.func @transform_1(%arg0: i32) -> (i32, i32) {
    %c0_i32 = arith.constant 0 : i32
    %c0_i32_0 = arith.constant 0 : i32
    %c0_i32_1 = arith.constant 0 : i32
    return %c0_i32, %c0_i32_0 : i32, i32
  }
  func.func @transform_2(%arg0: i32) -> (i32, i32) {
    %c0_i32 = arith.constant 0 : i32
    %c0_i32_0 = arith.constant 0 : i32
    %c0_i32_1 = arith.constant 0 : i32
    return %c0_i32, %c0_i32_0 : i32, i32
  }
  func.func @transform_3(%arg0: i32) -> (i32, i32) {
    %c0_i32 = arith.constant 0 : i32
    %c0_i32_0 = arith.constant 0 : i32
    return %arg0, %c0_i32 : i32, i32
  }
}

</mosaic_0001>

<bundles_post_ra>
// kernel: a2c_forward.1
= control target key start
LH: loop header
LB: loop body
LE: loop exit
PB: predicated region body
PF: predicated region fallthrough
CT: control target
= control target key end

     0   :  { %8 = vsyncpa [#allocation3], 0  ;;  %s251_s0 = inlined_call_operand.hbm [shape: f32[8,32], index: 0, kind: input, shape index: {}]   ;;  %s252_s1 = inlined_call_operand.hbm [shape: bf16[32,128], index: 1, kind: input, shape index: {}]   ;;  %s253_s2 = inlined_call_operand.vmem [shape: f32[1,128], index: 2, kind: input, shape index: {}]   ;;  %s254_s3 = inlined_call_operand.vmem [shape: f32[8,128], index: 3, kind: output, shape index: {}]  }
   0x1   :  { %9 = vsyncpa [#allocation5], 0  ;;  %s188_s12 = smov [#allocation2]   ;;  %s189_s14 = smov [#allocation4]  }
   0x2   :  { %s16_s13 = sshll.u32 %s188_s12, 4  ;;  %s25_s15 = sshll.u32 %s189_s14, 4  ;;  %s17_s13 = int_to_ptr.vmem [resolvable:$true] %s16_s13  ;;  %s214_s15 = int_to_ptr.vmem [resolvable:$true] %s25_s15 }
   0x3   :  { %s140_s18 = scalar_lea.hbm %s251_s0, 128 }
   0x4   :  { %p141_p0 = scmp.ne.s32.totalorder %s251_s0, %s140_s18  ;;  %p144_p1 = scmp.lt.u32.totalorder %s140_s18, %s251_s0 }
   0x6   :  { %p146_p2 = pnand %p144_p1, %p141_p0 }
   0x8   :  { %149 = shalt.err (!%p146_p2)
}
   0x9   :  { %s150_s23 = scalar_lea.vmem %s17_s13, 128  ;;  %p155_p4 = scmp.lt.s32.totalorder %s17_s13, %s17_s13 }
   0xa   :  { %p151_p3 = scmp.ne.s32.totalorder %s17_s13, %s150_s23  ;;  %p156_p5 = scmp.lt.s32.totalorder %s150_s23, %s150_s23 }
   0xc   :  { %p157_p6 = por %p156_p5, %p155_p4 }
   0xe   :  { %p158_p7 = pnand %p157_p6, %p151_p3 }
  0x10   :  { %161 = shalt.err (!%p158_p7)
}
  0x11   :  { %19 = dma.hbm_to_vmem [thread:$0]  %s251_s0, 128, %s17_s13, [#allocation3]  }
  0x12   :  { %s162_s28 = scalar_lea.hbm %s252_s1, 256 }
  0x13   :  { %p163_p8 = scmp.ne.s32.totalorder %s252_s1, %s162_s28  ;;  %p166_p9 = scmp.lt.u32.totalorder %s162_s28, %s252_s1 }
  0x15   :  { %p168_p10 = pnand %p166_p9, %p163_p8 }
  0x17   :  { %171 = shalt.err (!%p168_p10)
}
  0x18   :  { %s172_s6 = scalar_lea.vmem %s214_s15, 256  ;;  %p177_p12 = scmp.lt.s32.totalorder %s214_s15, %s214_s15 }
  0x19   :  { %p173_p11 = scmp.ne.s32.totalorder %s214_s15, %s172_s6  ;;  %p178_p13 = scmp.lt.s32.totalorder %s172_s6, %s172_s6 }
  0x1b   :  { %p179_p0 = por %p178_p13, %p177_p12 }
  0x1d   :  { %p180_p1 = pnand %p179_p0, %p173_p11 }
  0x1f   :  { %183 = shalt.err (!%p180_p1)
}
  0x20   :  { %s190_s0 = smov 64   ;;  %s191_s7 = smov 4  }
  0x21   :  { %31 = dma.hbm_to_vmem [thread:$0]  %s252_s1, 256, %s214_s15, [#allocation5], %s190_s0, %s190_s0, %s191_s7  }
  0x22   :  { %184 = dma.done.wait [#allocation3], 128  }
  0x23   :  { %185 = vsyncadd [#allocation3], 4294967168 }
  0x24   :  { %186 = dma.done.wait [#allocation5], 256  }
  0x25   :  { %187 = vsyncadd [#allocation5], 4294967040  ;;  %v192_v0 = vmov 0.0   ;;  %vm193_vm0 = vmmov 0   ;;  %v138_v1 = vld [vmem:[#allocation4] sm:$0xff]   ;;  %v139_v2 = vld [vmem:[#allocation4 + $0x8] sm:$0xff]  }
  0x26   :  { %124 = vmatprep.subr.bf16.mxu0 %v192_v0  ;;  %128 = vmatprep.mubr.msk.bf16.mxu0 %vm193_vm0, %v192_v0  ;;  %v41_v3 = vld [vmem:[#allocation2] sm:$0xff]  ;;  %vm66_vm1 = vcmask 261120  }
  0x27   :  { %125 = vmatpush3.bf16.msra.mxu0 %v138_v1  ;;  %v42_v4 = vpack.c.bf16 %v41_v3, %v41_v3  ;;  %v117_v5 = vld [vmem:[%s253_s2] ss:$0 sm:$0xff] }
  0x28   :  { %126 = vmatprep.subr.bf16.mxu0 %v192_v0 }
  0x2b   :  { %127 = vmatpush3.bf16.msra.mxu0 %v139_v2 }
  0x2e   :  { %129 = vmatmul.mubr.msk.bf16.vlgmr.msra.gmra.mrb[0].mxu0 %vm66_vm1, %v42_v4 }
 0x101   :  { %v104_v6 = vpop.f32.mrb[0].mxu0 }
 0x102   :  { %v105_v7 = vadd.f32 %v117_v5, %v104_v6  ;;  %v130_v8 = vpop.f32.mrb[1].mxu0 }
 0x103   :  { %v107_v9 = vpop.f32.mrb[2].mxu0 }
 0x104   :  { %110 = vst [vmem:[%s254_s3] sm:$0xff] %v105_v7  ;;  %v131_v10 = vpop.f32.mrb[3].mxu0 }
 0x105   :  { %115 = vsyncpa [#allocation3], 1 }
 0x106   :  { %116 = vsyncpa [#allocation5], 1 }

</bundles_post_ra>
